<compile_context>
chip_gen: v5e
topology: v5e:2x2
jax: 0.10.0
libtpu: 0.0.40
codegen_flags: <defaults>
</compile_context>

<pallas_src>
import jax
import jax.numpy as jnp
from jax.experimental import pallas as pl
from jax.experimental.pallas import tpu as pltpu


def discriminator_kernel(x_ref, w1_ref, b1_ref, w2_ref, b2_ref, o_ref):
    # First linear (MXU matmul, f32 accumulate) + bias + ReLU (VPU).
    h = jnp.dot(x_ref[...], w1_ref[...], preferred_element_type=jnp.float32)
    h = jnp.maximum(h + b1_ref[...], 0.0)            # (TILE_B,128) + (1,128)

    # Second linear: 128 -> 1.  An N=1 matmul wastes the MXU, so do it as a
    # broadcast multiply (VALU) + lane reduce (XLU).
    logit = jnp.sum(h * w2_ref[...], axis=-1, keepdims=True)   # (TILE_B, 1)
    logit = logit + b2_ref[0, 0]                     # scalar bias from SMEM

    o_ref[...] = jax.nn.sigmoid(logit).astype(o_ref.dtype)


def _choose_tile_b(B, D):
    """Pick a batch tile: single block for tiny problems, otherwise a large
    multiple of 256 rows targeting ~4 MiB per streamed x tile (safe on the
    16/32 MiB default scoped VMEM of v5e/v6e/v7x with double-buffering)."""
    row_bytes = max(D, 1) * 4
    if B * row_bytes <= (2 << 20):       # <= 2 MiB: one un-tiled block is best
        return B
    tile = max(256, ((4 << 20) // row_bytes) // 256 * 256)
    return int(min(tile, B))


def discriminator_forward(x, w1, b1, w2_row, b2, *, tile_b=None, use_bf16=False):
    """x: (B, D) f32 -> (B, 1) f32.

    w1:     (D, 128)  (transposed vs. PyTorch's (128, D) Linear weight)
    b1:     (1, 128)
    w2_row: (1, 128)  (same layout as PyTorch's (1, 128) Linear weight)
    b2:     (1, 1)
    """
    B, D = x.shape
    H = w1.shape[1]

    if tile_b is None:
        tile_b = _choose_tile_b(B, D)
    tile_b = int(min(tile_b, B))

    # Pad the batch so it divides evenly into tiles (output is sliced back).
    num_tiles = pl.cdiv(B, tile_b)
    B_pad = num_tiles * tile_b
    if B_pad != B:
        x = jnp.pad(x, ((0, B_pad - B), (0, 0)))

    if use_bf16:
        # Halve HBM traffic for the streamed operand and use the bf16 MXU
        # path; accumulation stays f32 via preferred_element_type.
        x = x.astype(jnp.bfloat16)
        w1 = w1.astype(jnp.bfloat16)

    out = pl.pallas_call(
        discriminator_kernel,
        out_shape=jax.ShapeDtypeStruct((B_pad, 1), jnp.float32),
        grid=(num_tiles,),
        in_specs=[
            pl.BlockSpec((tile_b, D), lambda i: (i, 0)),         # x: streamed
            pl.BlockSpec((D, H), lambda i: (0, 0)),              # w1: resident
            pl.BlockSpec((1, H), lambda i: (0, 0)),              # b1: resident
            pl.BlockSpec((1, H), lambda i: (0, 0)),              # w2 row: resident
            pl.BlockSpec(memory_space=pltpu.MemorySpace.SMEM),   # b2: SMEM scalar
        ],
        out_specs=pl.BlockSpec((tile_b, 1), lambda i: (i, 0)),
        compiler_params=pltpu.CompilerParams(
            dimension_semantics=("parallel",),
            vmem_limit_bytes=32 * 1024 * 1024,   # <= v7x's 64 MiB physical VMEM
        ),
    )(x, w1, b1, w2_row, b2)

    return out[:B]


def init_params(key, input_dim, hidden=128):
    """Deterministic init mimicking PyTorch nn.Linear default (U(-1/sqrt(fan_in), +))."""
    k1, k2, k3, k4 = jax.random.split(key, 4)
    bound1 = 1.0 / jnp.sqrt(input_dim)
    bound2 = 1.0 / jnp.sqrt(hidden)
    w1 = jax.random.uniform(k1, (input_dim, hidden), jnp.float32, -bound1, bound1)
    b1 = jax.random.uniform(k2, (1, hidden), jnp.float32, -bound1, bound1)
    w2_row = jax.random.uniform(k3, (1, hidden), jnp.float32, -bound2, bound2)
    b2 = jax.random.uniform(k4, (1, 1), jnp.float32, -bound2, bound2)
    return w1, b1, w2_row, b2


def _reference(x, w1, b1, w2_row, b2):
    return jax.nn.sigmoid(jnp.maximum(x @ w1 + b1, 0.0) @ w2_row.T + b2)


if __name__ == "__main__":
    key = jax.random.PRNGKey(0)
    kx, kp, kx2 = jax.random.split(key, 3)

    hidden = 128
    batch, input_dim = 8, 32
    x = jax.random.normal(kx, (batch, input_dim), jnp.float32)
    w1, b1, w2_row, b2 = init_params(kp, input_dim, hidden)

    # 1) Tiny problem: single block (grid=1), strict f32 check.
    out = jax.block_until_ready(discriminator_forward(x, w1, b1, w2_row, b2))
    ref = _reference(x, w1, b1, w2_row, b2)
    assert out.shape == (batch, 1)
    assert jnp.allclose(out, ref, atol=1e-5, rtol=1e-5)

    # 2) Larger batch with a forced 256-row tile to exercise the pipelined
    #    grid path (weights stay VMEM-resident, x is double-buffered).
    big_b = 1024
    xb = jax.random.normal(kx2, (big_b, input_dim), jnp.float32)
    out_b = jax.block_until_ready(
        discriminator_forward(xb, w1, b1, w2_row, b2, tile_b=256))
    ref_b = _reference(xb, w1, b1, w2_row, b2)
    assert out_b.shape == (big_b, 1)
    assert jnp.allclose(out_b, ref_b, atol=1e-5, rtol=1e-5)

    # 3) bf16 streaming path (f32 accumulation), looser tolerance.
    out_bf = jax.block_until_ready(
        discriminator_forward(xb, w1, b1, w2_row, b2, tile_b=256, use_bf16=True))
    assert jnp.allclose(out_bf, ref_b, atol=5e-2, rtol=5e-2)

    print("KERNEL_OK")
</pallas_src>

<mosaic_0001>
module attributes {stable_mosaic.version = 11 : i64} {
  func.func @discriminator_kernel(%arg0: i32, %arg1: memref<8x32xf32, #tpu.memory_space<vmem>>, %arg2: memref<32x128xf32, #tpu.memory_space<vmem>>, %arg3: memref<1x128xf32, #tpu.memory_space<vmem>>, %arg4: memref<1x128xf32, #tpu.memory_space<vmem>>, %arg5: memref<1x1xf32, #tpu.memory_space<smem>>, %arg6: memref<8x1xf32, #tpu.memory_space<vmem>>) attributes {dimension_semantics = [#tpu.dimension_semantics<parallel>], iteration_bounds = array<i64: 1>, scalar_prefetch = 0 : i64, scratch_operands = 0 : i64, tpu.core_type = #tpu.core_type<tc>, window_params = [{transform_indices = @transform_0, window_bounds = array<i64: 8, 32>}, {pipeline_mode = #tpu.pipeline_mode<synchronous>, transform_indices = @transform_1, window_bounds = array<i64: 32, 128>}, {pipeline_mode = #tpu.pipeline_mode<synchronous>, transform_indices = @transform_2, window_bounds = array<i64: 1, 128>}, {pipeline_mode = #tpu.pipeline_mode<synchronous>, transform_indices = @transform_3, window_bounds = array<i64: 1, 128>}, {transform_indices = @transform_4, window_bounds = array<i64: 1, 1>}, {transform_indices = @transform_5, window_bounds = array<i64: 8, 1>}]} {
    %c0 = arith.constant 0 : index
    %c0_0 = arith.constant 0 : index
    %0 = vector.load %arg1[%c0, %c0_0] : memref<8x32xf32, #tpu.memory_space<vmem>>, vector<8x32xf32>
    %c0_1 = arith.constant 0 : index
    %c0_2 = arith.constant 0 : index
    %1 = vector.load %arg2[%c0_1, %c0_2] : memref<32x128xf32, #tpu.memory_space<vmem>>, vector<32x128xf32>
    %cst = arith.constant dense<0.000000e+00> : vector<8x128xf32>
    %2 = tpu.matmul %0, %1, %cst {dimension_numbers = #tpu.dot_dimension_numbers<[1], [0], [0], [1], [0, 0, 1, 1], [], []>} : vector<8x32xf32>, vector<32x128xf32>, vector<8x128xf32> -> vector<8x128xf32>
    %c0_3 = arith.constant 0 : index
    %c0_4 = arith.constant 0 : index
    %3 = vector.load %arg3[%c0_3, %c0_4] : memref<1x128xf32, #tpu.memory_space<vmem>>, vector<1x128xf32>
    %4 = vector.broadcast %3 : vector<1x128xf32> to vector<8x128xf32>
    %5 = arith.addf %2, %4 : vector<8x128xf32>
    %cst_5 = arith.constant 0.000000e+00 : f32
    %6 = vector.broadcast %cst_5 : f32 to vector<8x128xf32>
    %7 = arith.maximumf %5, %6 : vector<8x128xf32>
    %c0_6 = arith.constant 0 : index
    %c0_7 = arith.constant 0 : index
    %8 = vector.load %arg4[%c0_6, %c0_7] : memref<1x128xf32, #tpu.memory_space<vmem>>, vector<1x128xf32>
    %9 = vector.broadcast %8 : vector<1x128xf32> to vector<8x128xf32>
    %10 = arith.mulf %7, %9 : vector<8x128xf32>
    %cst_8 = arith.constant dense<0.000000e+00> : vector<8xf32>
    %11 = vector.multi_reduction <add>, %10, %cst_8 [1] : vector<8x128xf32> to vector<8xf32>
    %12 = vector.shape_cast %11 : vector<8xf32> to vector<8x1xf32>
    %c0_9 = arith.constant 0 : index
    %c0_10 = arith.constant 0 : index
    %13 = memref.load %arg5[%c0_9, %c0_10] : memref<1x1xf32, #tpu.memory_space<smem>>
    %14 = vector.broadcast %13 : f32 to vector<8x1xf32>
    %15 = arith.addf %12, %14 : vector<8x1xf32>
    %16 = arith.negf %15 : vector<8x1xf32>
    %17 = math.exp %16 : vector<8x1xf32>
    %cst_11 = arith.constant 1.000000e+00 : f32
    %18 = vector.broadcast %cst_11 : f32 to vector<8x1xf32>
    %19 = arith.addf %18, %17 : vector<8x1xf32>
    %20 = arith.divf %18, %19 : vector<8x1xf32>
    %c0_12 = arith.constant 0 : index
    %c0_13 = arith.constant 0 : index
    %21 = vector.load %arg6[%c0_12, %c0_13] : memref<8x1xf32, #tpu.memory_space<vmem>>, vector<8x1xf32>
    tpu.vector_store %arg6[%c0_12, %c0_13], %20 {strides = array<i32>} : memref<8x1xf32, #tpu.memory_space<vmem>>, vector<8x1xf32>,
    return
  }
  func.func @transform_0(%arg0: i32) -> (i32, i32) {
    %c0_i32 = arith.constant 0 : i32
    %c0_i32_0 = arith.constant 0 : i32
    return %arg0, %c0_i32 : i32, i32
  }
  func.func @transform_1(%arg0: i32) -> (i32, i32) {
    %c0_i32 = arith.constant 0 : i32
    %c0_i32_0 = arith.constant 0 : i32
    %c0_i32_1 = arith.constant 0 : i32
    return %c0_i32, %c0_i32_0 : i32, i32
  }
  func.func @transform_2(%arg0: i32) -> (i32, i32) {
    %c0_i32 = arith.constant 0 : i32
    %c0_i32_0 = arith.constant 0 : i32
    %c0_i32_1 = arith.constant 0 : i32
    return %c0_i32, %c0_i32_0 : i32, i32
  }
  func.func @transform_3(%arg0: i32) -> (i32, i32) {
    %c0_i32 = arith.constant 0 : i32
    %c0_i32_0 = arith.constant 0 : i32
    %c0_i32_1 = arith.constant 0 : i32
    return %c0_i32, %c0_i32_0 : i32, i32
  }
  func.func @transform_4(%arg0: i32) -> (i32, i32) {
    %c0_i32 = arith.constant 0 : i32
    %c0_i32_0 = arith.constant 0 : i32
    %c0_i32_1 = arith.constant 0 : i32
    return %c0_i32, %c0_i32_0 : i32, i32
  }
  func.func @transform_5(%arg0: i32) -> (i32, i32) {
    %c0_i32 = arith.constant 0 : i32
    %c0_i32_0 = arith.constant 0 : i32
    return %arg0, %c0_i32 : i32, i32
  }
}

</mosaic_0001>

<bundles_post_ra>
// kernel: tpu_custom_call.1
= control target key start
LH: loop header
LB: loop body
LE: loop exit
PB: predicated region body
PF: predicated region fallthrough
CT: control target
= control target key end

     0   :  { %11 = vsyncpa [#allocation4], 0  ;;  %s238_s0 = inlined_call_operand.hbm [shape: f32[8,32], index: 0, kind: input, shape index: {}]   ;;  %s239_s1 = inlined_call_operand.hbm [shape: f32[32,128], index: 1, kind: input, shape index: {}]   ;;  %s240_s2 = inlined_call_operand.vmem [shape: f32[1,128], index: 2, kind: input, shape index: {}]   ;;  %s241_s3 = inlined_call_operand.vmem [shape: f32[1,128], index: 3, kind: input, shape index: {}]   ;;  %s242_s4 = inlined_call_operand.<no memory space> [shape: f32[1,1], index: 4, kind: input, shape index: {}]   ;;  %s243_s5 = inlined_call_operand.vmem [shape: f32[8,1], index: 5, kind: output, shape index: {}]  }
   0x1   :  { %s18_s20 = sshll.u32 %s238_s0, 4  ;;  %s19_s20 = int_to_ptr.hbm [resolvable:$true] %s18_s20 }
   0x2   :  { %12 = vsyncpa [#allocation6], 0  ;;  %s186_s21 = smov [#allocation3]   ;;  %s28_s25 = sshll.u32 %s239_s1, 4  ;;  %s29_s25 = int_to_ptr.hbm [resolvable:$true] %s28_s25 }
   0x3   :  { %s20_s22 = sshll.u32 %s186_s21, 4  ;;  %s187_s26 = smov [#allocation5]   ;;  %s21_s22 = int_to_ptr.vmem [resolvable:$true] %s20_s22 }
   0x4   :  { %23 = dma.hbm_to_vmem [thread:$0]  %s19_s20, 128, %s21_s22, [#allocation4]  }
   0x5   :  { %s30_s27 = sshll.u32 %s187_s26, 4  ;;  %s188_s28 = smov 128   ;;  %s31_s27 = int_to_ptr.vmem [resolvable:$true] %s30_s27 }
   0x6   :  { %s189_s29 = smov 8  }
   0x7   :  { %36 = dma.hbm_to_vmem [thread:$0]  %s29_s25, 512, %s31_s27, [#allocation6], %s188_s28, %s188_s28, %s189_s29  }
   0x8   :  { %182 = dma.done.wait [#allocation4], 128  }
   0x9   :  { %183 = vsyncadd [#allocation4], 4294967168 }
   0xa   :  { %184 = dma.done.wait [#allocation6], 512  }
   0xb   :  { %185 = vsyncadd [#allocation6], 4294966784  ;;  %v55_v0 = vld [vmem:[#allocation5 + $0x18] sm:$0xff]  ;;  %v54_v1 = vld [vmem:[#allocation5 + $0x10] sm:$0xff]  ;;  %vm60_vm0 = vcmask 261120   ;;  %v93_v11 = vstv %s242_s4  ;;  %vm114_vm4 = vcmask 7168  }
   0xc   :  { %76 = vmatpush.msra.mxu0 %v55_v0  ;;  %v53_v2 = vld [vmem:[#allocation5 + $0x8] sm:$0xff]  ;;  %v52_v3 = vld [vmem:[#allocation5] sm:$0xff]  ;;  %v51_v4 = vld [vmem:[#allocation3] sm:$0xff] }
   0xd   :  { %v128_v5 = vld [vmem:[%s240_s2] ss:$0 sm:$0xff] }
   0xe   :  { %77 = vmatpush.msra.mxu0 %v54_v1  ;;  %v129_v8 = vld [vmem:[%s241_s3] ss:$0 sm:$0xff] }
  0x10   :  { %78 = vmatpush.msra.mxu0 %v53_v2 }
  0x12   :  { %79 = vmatpush.msra.mxu0 %v52_v3 }
  0x13   :  { %122 = vmatmul.msk.f32.vlgmr.msra.gmra.mxu0 %vm60_vm0, %v51_v4 }
  0x90   :  { %v81_v6 = vpop.f32.mrf.mxu0 }
  0x91   :  { %v82_v7 = vadd.f32 %v128_v5, %v81_v6 }
  0x93   :  { %v84_v9 = vmax.f32 %v82_v7, 0.0 }
  0x95   :  { %v89_v10 = vmul.f32 %v129_v8, %v84_v9 }
  0x97   :  { %90 = vadd.xlane.f32.xlu0 %v89_v10 }
 0x10a   :  { %v91_v12 = vpop.xlane.xlu0 %90 }
 0x10b   :  { %v94_v13 = vadd.f32 %v93_v11, %v91_v12 }
 0x10d   :  { %v123_v14 = vmul.f32 -1.442695, %v94_v13 }
 0x10f   :  { %130 = vpow2.f32 %v123_v14 }
 0x115   :  { %v131_v15 = vpop.eup %130 }
 0x116   :  { %v98_v16 = vadd.f32 1.0, %v131_v15 }
 0x118   :  { %132 = vrcp.f32 %v98_v16  ;;  %v110_v20 = vand.u32 2147483648, %v98_v16  ;;  %v108_v22 = vand.u32 2147483647, %v98_v16  ;;  %vm104_vm2 = vweird.f32 %v98_v16 }
 0x11a   :  { %v111_v24 = vor.u32 1.1754944e-38, %v110_v20  ;;  %vm109_vm5 = vcmp.eq.f32.partialorder %v108_v22, 8.507059e+37 }
 0x11e   :  { %v133_v17 = vpop.eup %132 }
 0x11f   :  { %v100_v18 = vmul.f32 %v133_v17, %v98_v16  ;;  %vm105_vm1 = vweird.f32 %v133_v17 }
 0x120   :  { %vm106_vm3 = vmor %vm104_vm2, %vm105_vm1 }
 0x121   :  { %v101_v19 = vsub.f32 1.0, %v100_v18 }
 0x123   :  { %v102_v21 = vmul.f32 %v133_v17, %v101_v19 }
 0x125   :  { %v103_v23 = vadd.f32 %v133_v17, %v102_v21 }
 0x127   :  { %v107_v25 = vsel %vm106_vm3, %v133_v17, %v103_v23 }
 0x128   :  { %v112_v26 = vsel %vm109_vm5, %v111_v24, %v107_v25 }
 0x129   :  { %115 = vst.msk [vmem:[%s243_s5] sm:$0xff] %vm114_vm4, %v112_v26 }
 0x12a   :  { %120 = vsyncpa [#allocation4], 1 }
 0x12b   :  { %121 = vsyncpa [#allocation6], 1 }

</bundles_post_ra>
